<compile_context>
chip_gen: v6e
topology: v6e:2x2x1
jax: 0.10.0
libtpu: 0.0.40
codegen_flags: <defaults>
</compile_context>

<pallas_src>
import jax
import jax.numpy as jnp
from jax.experimental import pallas as pl
from jax.experimental.pallas import tpu as pltpu


def _make_kernel(d_col: int, use_den_col: bool):
    """Build the kernel with trace-time choices baked in.

    d_col:       lane index of the ones column (only used if use_den_col).
    use_den_col: True  -> denominator rides the MXU matmul in a padding column.
                 False -> per-step VPU/XLU lane reduce into a (tm, 1) scratch.
    """

    def kernel(adj_ref, v1k_ref, wt_ref, v1i_ref, m_ref,
               w1_ref, w2_ref, w3_ref, out_ref, *scratch):
        k = pl.program_id(1)

        @pl.when(k == 0)
        def _init():
            out_ref[...] = jnp.zeros_like(out_ref)
            if not use_den_col:
                scratch[0][...] = jnp.zeros_like(scratch[0])

        # Fold relu(w) into the adjacency tile: adj @ (relu(w) * v1) ==
        # (adj * relu(w)^T) @ v1.  One VPU multiply feeds both the numerator
        # matmul and the denominator.  adj arrives as lossless bf16; the
        # multiply promotes to f32 so the MXU sees full-precision operands.
        adj_w = adj_ref[...].astype(jnp.float32) * jnp.maximum(wt_ref[...], 0.0)

        # Numerator accumulates straight into the f32 output block (its block
        # index is constant across k).  If a ones column is present in the v1
        # tile, column d_col of this product is exactly adj @ relu(w).
        out_ref[...] += jnp.dot(adj_w, v1k_ref[...],
                                preferred_element_type=jnp.float32)

        if not use_den_col:
            scratch[0][...] += jnp.sum(adj_w, axis=-1, keepdims=True)

        @pl.when(k == pl.num_programs(1) - 1)
        def _finalize():
            num = out_ref[...]                                    # (tm, D_pad)
            if use_den_col:
                lane = jax.lax.broadcasted_iota(jnp.int32, num.shape, 1)
                den = jnp.sum(jnp.where(lane == d_col, num, 0.0),
                              axis=-1, keepdims=True)             # adj @ relu(w)
            else:
                den = scratch[0][...]

            # Gate + normalization folded into one per-row scale (exact divide).
            scale = jnp.maximum(m_ref[...], 0.0) / (den + 1e-14)  # (tm, 1)

            term1 = jnp.dot(v1i_ref[...], w1_ref[...],
                            preferred_element_type=jnp.float32)   # v1 @ W1
            term2 = scale * jnp.dot(num, w2_ref[...],
                                    preferred_element_type=jnp.float32)
            out_ref[...] = (term1 + term2 + w3_ref[...]).astype(out_ref.dtype)

    return kernel


def edge_embedding_predict(v1, adj_1, w, m, W1, W2, W3, *,
                           tm=256, tk=512,
                           vmem_limit_bytes=48 * 1024 * 1024):
    """Forward pass of EdgeEmbeddingPredict (dense adjacency).

    tm: output row tile; tk: adj-column (reduction) tile.  Both are clamped to
    N; tm is additionally halved until the parallel row axis has >= 4 tiles
    (keeps both v7x TensorCores busy; no-op on v5e/v6e).
    """
    N, D = v1.shape
    f32 = jnp.float32
    LANE = 128

    # ---- tile selection ---------------------------------------------------
    tm = min(tm, N)
    tk = min(tk, N)
    while (N // tm) < 4 and tm >= 16 and (tm // 2) % 8 == 0 and N % (tm // 2) == 0:
        tm //= 2
    assert N % tm == 0 and N % tk == 0, "N must be divisible by the tile sizes"
    assert tm == N or tm % 8 == 0, "tm must be a multiple of 8 (or == N)"
    assert tk == N or tk % 128 == 0, "tk must be a multiple of 128 (or == N)"

    # ---- lane-dense feature padding ----------------------------------------
    D_pad = ((D + LANE - 1) // LANE) * LANE
    use_den_col = D_pad > D          # free padding column carries adj @ relu(w)
    d_col = D

    v1_f = v1.astype(f32)
    if D_pad > D:
        v1_pad = jnp.pad(v1_f, ((0, 0), (0, D_pad - D)))
        v1_pad = v1_pad.at[:, d_col].set(1.0)          # ones column -> denominator
        W1_pad = jnp.pad(W1.astype(f32), ((0, D_pad - D), (0, D_pad - D)))
        W2_pad = jnp.pad(W2.astype(f32), ((0, D_pad - D), (0, D_pad - D)))
        W3_pad = jnp.pad(W3.astype(f32), ((0, 0), (0, D_pad - D)))
    else:
        v1_pad, W1_pad, W2_pad, W3_pad = (v1_f, W1.astype(f32),
                                          W2.astype(f32), W3.astype(f32))

    # adj is exactly 0/1 -> bf16 cast is lossless and halves the dominant N^2
    # HBM stream (int8 would quarter it; bf16 kept for portability/safety).
    adj_c = adj_1.astype(jnp.bfloat16)
    w_row = w.astype(f32).reshape(1, N)                # lane-major relu(w) operand
    m_f = m.astype(f32)

    grid = (N // tm, N // tk)

    scratch_shapes = [] if use_den_col else [pltpu.VMEM((tm, 1), jnp.float32)]

    flops = 2 * N * N * D_pad + 4 * N * D_pad * D_pad + 6 * N * D_pad
    bytes_accessed = int(
        N * N * 2                            # adj (bf16)
        + (N // tm) * N * D_pad * 4          # v1 aggregation stream (re-read / row tile)
        + 3 * N * D_pad * 4                  # v1 self-term, W3, output
        + 2 * D_pad * D_pad * 4              # W1, W2
        + 2 * N * 4)                         # w, m

    out_pad = pl.pallas_call(
        _make_kernel(d_col, use_den_col),
        out_shape=jax.ShapeDtypeStruct((N, D_pad), jnp.float32),
        grid_spec=pltpu.PrefetchScalarGridSpec(
            num_scalar_prefetch=0,
            grid=grid,
            in_specs=[
                pl.BlockSpec((tm, tk), lambda i, k: (i, k)),        # adj (bf16)
                pl.BlockSpec((tk, D_pad), lambda i, k: (k, 0)),     # v1 (neighbor side)
                pl.BlockSpec((1, tk), lambda i, k: (0, k)),         # w as a row
                pl.BlockSpec((tm, D_pad), lambda i, k: (i, 0)),     # v1 row block (self term)
                pl.BlockSpec((tm, 1), lambda i, k: (i, 0)),         # m row block
                pl.BlockSpec((D_pad, D_pad), lambda i, k: (0, 0)),  # W1 (resident)
                pl.BlockSpec((D_pad, D_pad), lambda i, k: (0, 0)),  # W2 (resident)
                pl.BlockSpec((tm, D_pad), lambda i, k: (i, 0)),     # W3 row block
            ],
            out_specs=pl.BlockSpec((tm, D_pad), lambda i, k: (i, 0)),
            scratch_shapes=scratch_shapes,
        ),
        compiler_params=pltpu.CompilerParams(
            dimension_semantics=("parallel", "arbitrary"),
            vmem_limit_bytes=vmem_limit_bytes),
        cost_estimate=pl.CostEstimate(
            flops=flops, transcendentals=0, bytes_accessed=bytes_accessed),
    )(adj_c, v1_pad, w_row, v1_pad, m_f, W1_pad, W2_pad, W3_pad)

    return out_pad[:, :D] if D_pad > D else out_pad


def _reference(v1, adj_1, w, m, W1, W2, W3):
    w_relu = jnp.maximum(w, 0.0)
    agg = (adj_1 @ (w_relu * v1)) / (adj_1 @ w_relu + 1e-14)
    return v1 @ W1 + jnp.maximum(m, 0.0) * (agg @ W2) + W3


if __name__ == "__main__":
    key = jax.random.PRNGKey(0)

    # ---- Test 1: module's native toy shapes (N_nodes1=16, dim=16 -> D=32) with
    #      reset_parameters() init.  Exercises the padded-D ones-column path.
    N1, dim = 16, 16
    D = 2 * dim
    k1, k2 = jax.random.split(key)
    v1 = jax.random.normal(k1, (N1, D), dtype=jnp.float32)
    adj_1 = (jax.random.uniform(k2, (N1, N1)) < 0.3).astype(jnp.float32)
    m = jnp.full((N1, 1), 0.1, dtype=jnp.float32)
    w = jnp.full((N1, 1), 0.1, dtype=jnp.float32)
    W1 = jnp.eye(D, dtype=jnp.float32)
    W2 = jnp.eye(D, dtype=jnp.float32)
    W3 = jnp.zeros((N1, D), dtype=jnp.float32)

    out = jax.block_until_ready(edge_embedding_predict(v1, adj_1, w, m, W1, W2, W3))
    ref = _reference(v1, adj_1, w, m, W1, W2, W3)
    assert jnp.allclose(out, ref, atol=1e-5, rtol=1e-5), "toy-shape mismatch"

    # ---- Test 2: larger graph, random (trained-like) params; multi-step
    #      (row x reduction) grid with the output block as accumulator.
    N2, dim2 = 256, 16
    D2 = 2 * dim2
    ks = jax.random.split(key, 8)
    v1b = jax.random.normal(ks[0], (N2, D2), dtype=jnp.float32)
    adjb = (jax.random.uniform(ks[1], (N2, N2)) < 0.1).astype(jnp.float32)
    mb = jax.random.normal(ks[2], (N2, 1), dtype=jnp.float32)
    wb = jax.random.normal(ks[3], (N2, 1), dtype=jnp.float32)
    W1b = jax.random.normal(ks[4], (D2, D2), dtype=jnp.float32) * 0.1
    W2b = jax.random.normal(ks[5], (D2, D2), dtype=jnp.float32) * 0.1
    W3b = jax.random.normal(ks[6], (N2, D2), dtype=jnp.float32) * 0.1

    outb = jax.block_until_ready(
        edge_embedding_predict(v1b, adjb, wb, mb, W1b, W2b, W3b, tm=64, tk=128))
    refb = _reference(v1b, adjb, wb, mb, W1b, W2b, W3b)
    assert jnp.allclose(outb, refb, atol=1e-4, rtol=1e-4), "blocked-grid mismatch"

    # ---- Test 3: D already a multiple of 128 -> exercises the lane-reduce
    #      denominator fallback (no padding column).
    N3, dim3 = 128, 64
    D3 = 2 * dim3
    kt = jax.random.split(jax.random.PRNGKey(0), 8)
    v1c = jax.random.normal(kt[0], (N3, D3), dtype=jnp.float32)
    adjc = (jax.random.uniform(kt[1], (N3, N3)) < 0.2).astype(jnp.float32)
    mc = jax.random.normal(kt[2], (N3, 1), dtype=jnp.float32)
    wc = jax.random.normal(kt[3], (N3, 1), dtype=jnp.float32)
    W1c = jax.random.normal(kt[4], (D3, D3), dtype=jnp.float32) * 0.1
    W2c = jax.random.normal(kt[5], (D3, D3), dtype=jnp.float32) * 0.1
    W3c = jax.random.normal(kt[6], (N3, D3), dtype=jnp.float32) * 0.1

    outc = jax.block_until_ready(
        edge_embedding_predict(v1c, adjc, wc, mc, W1c, W2c, W3c))
    refc = _reference(v1c, adjc, wc, mc, W1c, W2c, W3c)
    assert jnp.allclose(outc, refc, atol=1e-4, rtol=1e-4), "aligned-D mismatch"

    print("KERNEL_OK")
</pallas_src>

<mosaic_0001>
module attributes {stable_mosaic.version = 11 : i64} {
  func.func @kernel(%arg0: i32, %arg1: i32, %arg2: memref<8x16xbf16, #tpu.memory_space<vmem>>, %arg3: memref<16x128xf32, #tpu.memory_space<vmem>>, %arg4: memref<1x16xf32, #tpu.memory_space<vmem>>, %arg5: memref<8x128xf32, #tpu.memory_space<vmem>>, %arg6: memref<8x1xf32, #tpu.memory_space<vmem>>, %arg7: memref<128x128xf32, #tpu.memory_space<vmem>>, %arg8: memref<128x128xf32, #tpu.memory_space<vmem>>, %arg9: memref<8x128xf32, #tpu.memory_space<vmem>>, %arg10: memref<8x128xf32, #tpu.memory_space<vmem>>) attributes {dimension_semantics = [#tpu.dimension_semantics<parallel>, #tpu.dimension_semantics<arbitrary>], iteration_bounds = array<i64: 2, 1>, scalar_prefetch = 0 : i64, scratch_operands = 0 : i64, tpu.core_type = #tpu.core_type<tc>, window_params = [{transform_indices = @transform_0, window_bounds = array<i64: 8, 16>}, {transform_indices = @transform_1, window_bounds = array<i64: 16, 128>}, {transform_indices = @transform_2, window_bounds = array<i64: 1, 16>}, {transform_indices = @transform_3, window_bounds = array<i64: 8, 128>}, {transform_indices = @transform_4, window_bounds = array<i64: 8, 1>}, {pipeline_mode = #tpu.pipeline_mode<synchronous>, transform_indices = @transform_5, window_bounds = array<i64: 128, 128>}, {pipeline_mode = #tpu.pipeline_mode<synchronous>, transform_indices = @transform_6, window_bounds = array<i64: 128, 128>}, {transform_indices = @transform_7, window_bounds = array<i64: 8, 128>}, {transform_indices = @transform_8, window_bounds = array<i64: 8, 128>}]} {
    %c0_i32 = arith.constant 0 : i32
    %0 = arith.cmpi eq, %arg1, %c0_i32 : i32
    %1 = arith.extui %0 : i1 to i32
    %c0_i32_0 = arith.constant 0 : i32
    %2 = arith.cmpi ne, %1, %c0_i32_0 : i32
    scf.if %2 {
      %cst_13 = arith.constant 0.000000e+00 : f32
      %18 = vector.broadcast %cst_13 : f32 to vector<8x128xf32>
      %c0_14 = arith.constant 0 : index
      %c0_15 = arith.constant 0 : index
      %19 = vector.load %arg10[%c0_14, %c0_15] : memref<8x128xf32, #tpu.memory_space<vmem>>, vector<8x128xf32>
      tpu.vector_store %arg10[%c0_14, %c0_15], %18 {strides = array<i32>} : memref<8x128xf32, #tpu.memory_space<vmem>>, vector<8x128xf32>,
    } else {
    }
    %c0 = arith.constant 0 : index
    %c0_1 = arith.constant 0 : index
    %3 = vector.load %arg2[%c0, %c0_1] : memref<8x16xbf16, #tpu.memory_space<vmem>>, vector<8x16xbf16>
    %4 = arith.extf %3 : vector<8x16xbf16> to vector<8x16xf32>
    %c0_2 = arith.constant 0 : index
    %c0_3 = arith.constant 0 : index
    %5 = vector.load %arg4[%c0_2, %c0_3] : memref<1x16xf32, #tpu.memory_space<vmem>>, vector<1x16xf32>
    %cst = arith.constant 0.000000e+00 : f32
    %6 = vector.broadcast %cst : f32 to vector<1x16xf32>
    %7 = arith.maximumf %5, %6 : vector<1x16xf32>
    %8 = vector.broadcast %7 : vector<1x16xf32> to vector<8x16xf32>
    %9 = arith.mulf %4, %8 : vector<8x16xf32>
    %c0_4 = arith.constant 0 : index
    %c0_5 = arith.constant 0 : index
    %10 = vector.load %arg10[%c0_4, %c0_5] : memref<8x128xf32, #tpu.memory_space<vmem>>, vector<8x128xf32>
    %c0_6 = arith.constant 0 : index
    %c0_7 = arith.constant 0 : index
    %11 = vector.load %arg3[%c0_6, %c0_7] : memref<16x128xf32, #tpu.memory_space<vmem>>, vector<16x128xf32>
    %cst_8 = arith.constant dense<0.000000e+00> : vector<8x128xf32>
    %12 = tpu.matmul %9, %11, %cst_8 {dimension_numbers = #tpu.dot_dimension_numbers<[1], [0], [0], [1], [0, 0, 1, 1], [], []>} : vector<8x16xf32>, vector<16x128xf32>, vector<8x128xf32> -> vector<8x128xf32>
    %13 = arith.addf %10, %12 : vector<8x128xf32>
    %c0_9 = arith.constant 0 : index
    %c0_10 = arith.constant 0 : index
    %14 = vector.load %arg10[%c0_9, %c0_10] : memref<8x128xf32, #tpu.memory_space<vmem>>, vector<8x128xf32>
    tpu.vector_store %arg10[%c0_9, %c0_10], %13 {strides = array<i32>} : memref<8x128xf32, #tpu.memory_space<vmem>>, vector<8x128xf32>,
    %c0_i32_11 = arith.constant 0 : i32
    %15 = arith.cmpi eq, %arg1, %c0_i32_11 : i32
    %16 = arith.extui %15 : i1 to i32
    %c0_i32_12 = arith.constant 0 : i32
    %17 = arith.cmpi ne, %16, %c0_i32_12 : i32
    scf.if %17 {
      %c0_13 = arith.constant 0 : index
      %c0_14 = arith.constant 0 : index
      %18 = vector.load %arg10[%c0_13, %c0_14] : memref<8x128xf32, #tpu.memory_space<vmem>>, vector<8x128xf32>
      %19 = tpu.iota {dimensions = array<i32: 1>} : vector<8x128xi32>
      %c32_i32 = arith.constant 32 : i32
      %20 = vector.broadcast %c32_i32 : i32 to vector<8x128xi32>
      %21 = arith.cmpi eq, %19, %20 : vector<8x128xi32>
      %cst_15 = arith.constant 0.000000e+00 : f32
      %22 = vector.broadcast %cst_15 : f32 to vector<8x128xf32>
      %23 = arith.select %21, %18, %22 : vector<8x128xi1>, vector<8x128xf32>
      %cst_16 = arith.constant dense<0.000000e+00> : vector<8xf32>
      %24 = vector.multi_reduction <add>, %23, %cst_16 [1] : vector<8x128xf32> to vector<8xf32>
      %25 = vector.shape_cast %24 : vector<8xf32> to vector<8x1xf32>
      %c0_17 = arith.constant 0 : index
      %c0_18 = arith.constant 0 : index
      %26 = vector.load %arg6[%c0_17, %c0_18] : memref<8x1xf32, #tpu.memory_space<vmem>>, vector<8x1xf32>
      %cst_19 = arith.constant 0.000000e+00 : f32
      %27 = vector.broadcast %cst_19 : f32 to vector<8x1xf32>
      %28 = arith.maximumf %26, %27 : vector<8x1xf32>
      %cst_20 = arith.constant 9.99999982E-15 : f32
      %29 = vector.broadcast %cst_20 : f32 to vector<8x1xf32>
      %30 = arith.addf %25, %29 : vector<8x1xf32>
      %31 = arith.divf %28, %30 : vector<8x1xf32>
      %c0_21 = arith.constant 0 : index
      %c0_22 = arith.constant 0 : index
      %32 = vector.load %arg5[%c0_21, %c0_22] : memref<8x128xf32, #tpu.memory_space<vmem>>, vector<8x128xf32>
      %c0_23 = arith.constant 0 : index
      %c0_24 = arith.constant 0 : index
      %33 = vector.load %arg7[%c0_23, %c0_24] : memref<128x128xf32, #tpu.memory_space<vmem>>, vector<128x128xf32>
      %cst_25 = arith.constant dense<0.000000e+00> : vector<8x128xf32>
      %34 = tpu.matmul %32, %33, %cst_25 {dimension_numbers = #tpu.dot_dimension_numbers<[1], [0], [0], [1], [0, 0, 1, 1], [], []>} : vector<8x128xf32>, vector<128x128xf32>, vector<8x128xf32> -> vector<8x128xf32>
      %c0_26 = arith.constant 0 : index
      %c0_27 = arith.constant 0 : index
      %35 = vector.load %arg8[%c0_26, %c0_27] : memref<128x128xf32, #tpu.memory_space<vmem>>, vector<128x128xf32>
      %cst_28 = arith.constant dense<0.000000e+00> : vector<8x128xf32>
      %36 = tpu.matmul %18, %35, %cst_28 {dimension_numbers = #tpu.dot_dimension_numbers<[1], [0], [0], [1], [0, 0, 1, 1], [], []>} : vector<8x128xf32>, vector<128x128xf32>, vector<8x128xf32> -> vector<8x128xf32>
      %37 = vector.broadcast %31 : vector<8x1xf32> to vector<8x128xf32>
      %38 = arith.mulf %37, %36 : vector<8x128xf32>
      %39 = arith.addf %34, %38 : vector<8x128xf32>
      %c0_29 = arith.constant 0 : index
      %c0_30 = arith.constant 0 : index
      %40 = vector.load %arg9[%c0_29, %c0_30] : memref<8x128xf32, #tpu.memory_space<vmem>>, vector<8x128xf32>
      %41 = arith.addf %39, %40 : vector<8x128xf32>
      %c0_31 = arith.constant 0 : index
      %c0_32 = arith.constant 0 : index
      %42 = vector.load %arg10[%c0_31, %c0_32] : memref<8x128xf32, #tpu.memory_space<vmem>>, vector<8x128xf32>
      tpu.vector_store %arg10[%c0_31, %c0_32], %41 {strides = array<i32>} : memref<8x128xf32, #tpu.memory_space<vmem>>, vector<8x128xf32>,
    } else {
    }
    return
  }
  func.func @transform_0(%arg0: i32, %arg1: i32) -> (i32, i32) {
    %c0_i32 = arith.constant 0 : i32
    return %arg0, %arg1 : i32, i32
  }
  func.func @transform_1(%arg0: i32, %arg1: i32) -> (i32, i32) {
    %c0_i32 = arith.constant 0 : i32
    %c0_i32_0 = arith.constant 0 : i32
    return %arg1, %c0_i32 : i32, i32
  }
  func.func @transform_2(%arg0: i32, %arg1: i32) -> (i32, i32) {
    %c0_i32 = arith.constant 0 : i32
    %c0_i32_0 = arith.constant 0 : i32
    return %c0_i32, %arg1 : i32, i32
  }
  func.func @transform_3(%arg0: i32, %arg1: i32) -> (i32, i32) {
    %c0_i32 = arith.constant 0 : i32
    %c0_i32_0 = arith.constant 0 : i32
    return %arg0, %c0_i32 : i32, i32
  }
  func.func @transform_4(%arg0: i32, %arg1: i32) -> (i32, i32) {
    %c0_i32 = arith.constant 0 : i32
    %c0_i32_0 = arith.constant 0 : i32
    return %arg0, %c0_i32 : i32, i32
  }
  func.func @transform_5(%arg0: i32, %arg1: i32) -> (i32, i32) {
    %c0_i32 = arith.constant 0 : i32
    %c0_i32_0 = arith.constant 0 : i32
    %c0_i32_1 = arith.constant 0 : i32
    return %c0_i32, %c0_i32_0 : i32, i32
  }
  func.func @transform_6(%arg0: i32, %arg1: i32) -> (i32, i32) {
    %c0_i32 = arith.constant 0 : i32
    %c0_i32_0 = arith.constant 0 : i32
    %c0_i32_1 = arith.constant 0 : i32
    return %c0_i32, %c0_i32_0 : i32, i32
  }
  func.func @transform_7(%arg0: i32, %arg1: i32) -> (i32, i32) {
    %c0_i32 = arith.constant 0 : i32
    %c0_i32_0 = arith.constant 0 : i32
    return %arg0, %c0_i32 : i32, i32
  }
  func.func @transform_8(%arg0: i32, %arg1: i32) -> (i32, i32) {
    %c0_i32 = arith.constant 0 : i32
    %c0_i32_0 = arith.constant 0 : i32
    return %arg0, %c0_i32 : i32, i32
  }
}

</mosaic_0001>

<bundles_post_ra>
// kernel: tpu_custom_call.1
= control target key start
LH: loop header
LB: loop body
LE: loop exit
PB: predicated region body
PF: predicated region fallthrough
CT: control target
= control target key end

     0   :  { %s1804_s0 = inlined_call_operand.hbm [shape: bf16[16,16], index: 0, kind: input, shape index: {}]   ;;  %s1805_s1 = inlined_call_operand.vmem [shape: f32[16,128], index: 1, kind: input, shape index: {}]   ;;  %s1806_s2 = inlined_call_operand.vmem [shape: f32[1,16], index: 2, kind: input, shape index: {}]   ;;  %s1807_s3 = inlined_call_operand.hbm [shape: f32[16,128], index: 3, kind: input, shape index: {}]   ;;  %s1808_s4 = inlined_call_operand.vmem [shape: f32[16,1], index: 4, kind: input, shape index: {}]   ;;  %s1809_s5 = inlined_call_operand.hbm [shape: f32[128,128], index: 5, kind: input, shape index: {}]   ;;  %s1810_s6 = inlined_call_operand.hbm [shape: f32[128,128], index: 6, kind: input, shape index: {}]   ;;  %s1811_s7 = inlined_call_operand.hbm [shape: f32[16,128], index: 7, kind: input, shape index: {}]   ;;  %s1812_s8 = inlined_call_operand.hbm [shape: f32[16,128], index: 8, kind: output, shape index: {}]  }
   0x1   :  { %1824 = sst [smem:[#allocation22_spill]] %s1804_s0 }
   0x2   :  { %1825 = sst [smem:[#allocation23_spill]] %s1807_s3 }
   0x3   :  { %1826 = sst [smem:[#allocation24_spill]] %s1808_s4 }
   0x4   :  { %1827 = sst [smem:[#allocation25_spill]] %s1809_s5 }
   0x5   :  { %1828 = sst [smem:[#allocation26_spill]] %s1812_s8 }
   0x6   :  { %13 = vsyncpa [#allocation3], 0 }
   0x7   :  { %15 = vsyncpa [#allocation3 + $0x1], 0 }
   0x8   :  { %16 = vsyncpa [#allocation6], 0 }
   0x9   :  { %18 = vsyncpa [#allocation6 + $0x1], 0 }
   0xa   :  { %19 = vsyncpa [#allocation9], 0 }
   0xb   :  { %20 = vsyncpa [#allocation4], 0 }
   0xc   :  { %22 = vsyncpa [#allocation4 + $0x1], 0  ;;  %s1507_s27 = smov 0   ;;  %s1509_s28 = smov 0  }
   0xd   :  { %s1511_s29 = smov 0   ;;  %s1513_s30 = smov 0  }
   0xe   :  { %s1515_s9 = smov 0   ;;  %s1517_s10 = smov 0  }
   0xf LB: > { %1829 = sst [smem:[#allocation18_spill]] %s1429_s27  ;;  %s1538_s11 = sadd.s32 4294967295, %s1449_s10   ;;  %s1449_s10 = sphi %s1517_s10, %s28_s10   ;;  %s1445_s9 = sphi %s1515_s9, %s1860_s9   ;;  %s1441_s30 = sphi %s1513_s30, %s1859_s30   ;;  %s1437_s29 = sphi %s1511_s29, %s1863_s29   ;;  %s1433_s28 = sphi %s1509_s28, %s1862_s28   ;;  %s1429_s27 = sphi %s1507_s27, %s1861_s27  }
  0x10   : > { %1830 = sst [smem:[#allocation19_spill]] %s1445_s9  ;;  %s976_s12 = sadd.s32 4294967294, %s1449_s10  }
  0x11   : > { %p62_p0 = scmp.ne.s32.totalorder %s1433_s28, %s1429_s27  ;;  %p1819_p1 = scmp.eq.s32.totalorder %s1538_s11, 0 }
  0x12   : > { %p264_p3 = scmp.eq.s32.totalorder %s976_s12, 1  ;;  %p977_p5 = scmp.ge.s32.totalorder %s1449_s10, 1 }
  0x13   : > { %p1547_p4 = por %p1819_p1, %p62_p0  ;;  %p271_p7 = scmp.lt.s32.totalorder %s1449_s10, 3 }
  0x14   : > { %p1552_p6 = por %p264_p3, %p62_p0  ;;  %s1451_s16 = smov [#allocation7]  }
  0x15   : > { %p1557_p8 = pnand %p977_p5, %p271_p7  ;;  %s298_s17 = sshll.u32 %s1451_s16, 4  ;;  %s299_s17 = int_to_ptr.vmem [resolvable:$true] %s298_s17 }
  0x16   : > { %s1832_s14 = scalar_select %p1552_p6, 1, 0 }
  0x17   : > { %p1132_p9 = pneg %p1557_p8  ;;  %s40_s19 = sadd.s32 1, %s1445_s9 }
  0x18   : > { %1833 = sst [smem:[#allocation20_spill]] %s1832_s14  ;;  %s1228_s20 = scalar_lea.vmem %s299_s17, 2048 }
  0x19   : > { %p1566_p11 = pnand %p1132_p9, %p1819_p1  ;;  %p1229_p13 = scmp.ne.s32.totalorder %s299_s17, %s1228_s20 }
  0x1a   : > { %p1236_p5 = scmp.lt.s32.totalorder %s299_s17, %s299_s17  ;;  %p1237_p7 = scmp.lt.s32.totalorder %s1228_s20, %s1228_s20 }
  0x1b   : > { %p1820_p12 = pneg %p1566_p11 }
  0x1c   : > { %p1238_p2 = por %p1237_p7, %p1236_p5 }
  0x1d   : > { %p1231_p0 = pnand %p1229_p13, %p1820_p12 }
  0x1f   : > { %p1232_p3 = pneg %p1231_p0 }
  0x21   : > { %p1239_p10 = pnand %p1238_p2, %p1232_p3 }
  0x23   : > { %1242 = shalt.err (!%p1239_p10)
}
  0x24   : > { %s1813_s21 = smov 128   ;;  %s1814_s22 = smov 8  }
  0x25   : > { %s1836_s5 = sld [smem:[#allocation25_spill]]  ;;  %p42_p2 = scmp.ge.s32.totalorder %s40_s19, 2 }
  0x26   : > { %s49_s25 = sadd.s32 1, %s1437_s29  ;;  %p56_p9 = scmp.ne.s32.totalorder %s1437_s29, %s1433_s28 }
  0x27   : > { %p57_p10 = scmp.eq.s32.totalorder %s1449_s10, 0  ;;  %s1865_s19 = smov (%p42_p2, %s40_s19), 0 }
  0x28   : > { %1837 = sst [smem:[#allocation21_spill]] %s1865_s19  ;;  %p1839_p0 = scmp.eq.s32.totalorder %s1538_s11, 1 }
  0x29   : > { %p1590_p13 = por %p57_p10, %p56_p9  ;;  %s44_s16 = ssub.s32 %s1445_s9, %s1865_s19 }
  0x2a   : > { %p1596_p3 = por %p1839_p0, %p56_p9  ;;  %p1155_p5 = scmp.lt.s32.totalorder %s1449_s10, 2 }
  0x2b   : > { %1135 = dma.hbm_to_vmem [thread:$0]  (!%p1566_p11), %s1836_s5, 2048, %s299_s17, [#allocation6], %s1813_s21, %s1813_s21, %s1814_s22  }
  0x2c   : > { %p47_p7 = scmp.eq.s32.totalorder %s44_s16, 0  ;;  %s1821_s17 = sand.u32 1, %s1449_s10  }
  0x2d   : > { %s327_s20 = sand.u32 1, %s1437_s29   ;;  %s984_s21 = sshll.u32 %s1445_s9, 6 }
  0x2e   : > { %s1606_s23 = scalar_select %p47_p7, %s1437_s29, %s49_s25  }
  0x2f   : > { %s983_s24 = sshll.u32 %s327_s20, 2  ;;  %s1841_s0 = sld [smem:[#allocation22_spill]] }
  0x30   : > { %s329_s27 = scalar_lea.vmem [#allocation2], %s983_s24  ;;  %p1614_p2 = pnand %p1155_p5, %p1590_p13 }
  0x31   : > { %s337_s8 = sshll.u32 %s329_s27, 4  ;;  %s1618_s16 = sshll.u32 %s327_s20, 3  ;;  %s338_s8 = int_to_ptr.vmem [resolvable:$true] %s337_s8 }
  0x32   : > { %s1622_s25 = scalar_lea.sflag [#allocation3], %s1821_s17  ;;  %p1822_p9 = pneg %p1614_p2 }
  0x33   : > { %s1256_s19 = scalar_lea.vmem %s338_s8, 64  ;;  %s1454_s5 = smov [#allocation2]  }
  0x34   : > { %p1257_p10 = scmp.ne.s32.totalorder %s338_s8, %s1256_s19  ;;  %s1261_s27 = sshll.u32 %s1454_s5, 4  ;;  %s1262_s27 = int_to_ptr.vmem [resolvable:$false] %s1261_s27 }
  0x35   : > { %s335_s14 = scalar_lea.hbm %s1841_s0, %s984_s21  ;;  %s1263_s21 = scalar_lea.vmem %s1262_s27, 128 }
  0x36   : > { %p1259_p0 = pnand %p1257_p10, %p1822_p9  ;;  %p1264_p13 = scmp.lt.s32.totalorder %s338_s8, %s1262_s27 }
  0x37   : > { %p1265_p5 = scmp.lt.s32.totalorder %s1263_s21, %s1256_s19 }
  0x38   : > { %p1260_p7 = pneg %p1259_p0 }
  0x39   : > { %p1266_p1 = por %p1265_p5, %p1264_p13 }
  0x3b   : > { %p1267_p12 = pnand %p1266_p1, %p1260_p7 }
  0x3d   : > { %1270 = shalt.err (!%p1267_p12)
}
  0x3e   : > { %1142 = dma.hbm_to_vmem [thread:$0]  (!%p1614_p2), %s335_s14, 64, %s338_s8, %s1622_s25  }
  0x3f   : > { %s1455_s22 = smov [#allocation8]   ;;  %s986_s20 = sshll.u32 %s1445_s9, 7 }
  0x40   : > { %s311_s26 = sshll.u32 %s1455_s22, 4  ;;  %s1843_s3 = sld [smem:[#allocation23_spill]]  ;;  %s312_s26 = int_to_ptr.vmem [resolvable:$true] %s311_s26 }
  0x41   : > { %s1282_s27 = scalar_lea.vmem %s312_s26, 2048  ;;  %p1844_p1 = pneg %p1566_p11 }
  0x42   : > { %p1283_p10 = scmp.ne.s32.totalorder %s312_s26, %s1282_s27  ;;  %p1290_p7 = scmp.lt.s32.totalorder %s312_s26, %s312_s26 }
  0x43   : > { %p1291_p13 = scmp.lt.s32.totalorder %s1282_s27, %s1282_s27 }
  0x44   : > { %p1285_p12 = pnand %p1283_p10, %p1844_p1 }
  0x45   : > { %p1292_p5 = por %p1291_p13, %p1290_p7 }
  0x46   : > { %s1636_s5 = scalar_lea.hbm %s1843_s3, %s986_s20  ;;  %p1286_p0 = pneg %p1285_p12 }
  0x48   : > { %p1293_p9 = pnand %p1292_p5, %p1286_p0 }
  0x4a   : > { %1296 = shalt.err (!%p1293_p9)
}
  0x4b   : > { %s1845_s8 = smov 8   ;;  %s1846_s14 = smov 128  }
  0x4c   : > { %1138 = dma.hbm_to_vmem [thread:$0]  (!%p1566_p11), %s1810_s6, 2048, %s312_s26, [#allocation9], %s1846_s14, %s1846_s14, %s1845_s8  }
  0x4d   : > { %s348_s21 = scalar_lea.vmem [#allocation5], %s1618_s16  ;;  %s1653_s0 = scalar_lea.hbm %s1811_s7, %s986_s20 }
  0x4e   : > { %s355_s22 = sshll.u32 %s348_s21, 4  ;;  %s1847_s3 = sand.u32 1, %s1449_s10   ;;  %s356_s22 = int_to_ptr.vmem [resolvable:$true] %s355_s22 }
  0x4f   : > { %s345_s18 = scalar_lea.sflag [#allocation6], %s1847_s3  ;;  %s1310_s9 = scalar_lea.vmem %s356_s22, 128 }
  0x50   : > { %p1311_p9 = scmp.ne.s32.totalorder %s356_s22, %s1310_s9  ;;  %p1848_p10 = pneg %p1614_p2 }
  0x51   : > { %s1456_s19 = smov [#allocation5]  }
  0x52   : > { %p1313_p1 = pnand %p1311_p9, %p1848_p10  ;;  %s1315_s17 = sshll.u32 %s1456_s19, 4  ;;  %s1316_s17 = int_to_ptr.vmem [resolvable:$false] %s1315_s17 }
  0x53   : > { %s1317_s26 = scalar_lea.vmem %s1316_s17, 256  ;;  %p1318_p11 = scmp.lt.s32.totalorder %s356_s22, %s1316_s17 }
  0x54   : > { %p1314_p12 = pneg %p1313_p1  ;;  %p1319_p0 = scmp.lt.s32.totalorder %s1317_s26, %s1310_s9 }
  0x56   : > { %p1320_p7 = por %p1319_p0, %p1318_p11 }
  0x58   : > { %p1321_p13 = pnand %p1320_p7, %p1314_p12 }
  0x5a   : > { %1324 = shalt.err (!%p1321_p13)
}
  0x5b   : > { %1145 = dma.hbm_to_vmem [thread:$0]  (!%p1614_p2), %s1636_s5, 128, %s356_s22, %s345_s18  }
  0x5c   : > { %s373_s3 = scalar_lea.vmem [#allocation10], %s1618_s16  ;;  %p1849_p9 = pmov %p1848_p10 }
  0x5d   : > { %s380_s20 = sshll.u32 %s373_s3, 4  ;;  %s1457_s14 = smov [#allocation10]   ;;  %s381_s20 = int_to_ptr.vmem [resolvable:$true] %s380_s20 }
  0x5e   : > { %s1338_s8 = scalar_lea.vmem %s381_s20, 128  ;;  %s1343_s9 = sshll.u32 %s1457_s14, 4  ;;  %s1344_s9 = int_to_ptr.vmem [resolvable:$false] %s1343_s9 }
  0x5f   : > { %p1339_p5 = scmp.ne.s32.totalorder %s381_s20, %s1338_s8  ;;  %s1345_s21 = scalar_lea.vmem %s1344_s9, 256 }
  0x60   : > { %p1346_p12 = scmp.lt.s32.totalorder %s381_s20, %s1344_s9  ;;  %p1347_p11 = scmp.lt.s32.totalorder %s1345_s21, %s1338_s8 }
  0x61   : > { %p1341_p10 = pnand %p1339_p5, %p1849_p9 }
  0x62   : > { %p1348_p0 = por %p1347_p11, %p1346_p12 }
  0x63   : > { %p1342_p1 = pneg %p1341_p10 }
  0x65   : > { %p1349_p7 = pnand %p1348_p0, %p1342_p1 }
  0x67   : > { %1352 = shalt.err (!%p1349_p7)
}
  0x68   : > { %1148 = dma.hbm_to_vmem [thread:$0]  (!%p1614_p2), %s1653_s0, 128, %s381_s20, %s1622_s25  }
  0x69   : > { %389 = sbr.rel (%p1557_p8) target bundleno = 626 (0x272), region = 52  ;;  %s391_s16 = sand.u32 (!%p1557_p8), 1, %s1538_s11  }
  0x6a   : > { %s1675_s5 = sand.u32 (!%p1557_p8), 1, %s1433_s28   ;;  %s392_s24 = scalar_lea.sflag (!%p1557_p8), [#allocation3], %s391_s16 }
  0x6b   : > { %s990_s22 = sshll.u32 (!%p1557_p8), %s1675_s5, 2 }
  0x6c   : > { %s395_s27 = scalar_lea.vmem (!%p1557_p8), [#allocation2], %s990_s22 }
  0x6e   : > { %1404 = dma.done.wait (%p1547_p4), %s392_s24, 64  }
  0x6f   : > { %1406 = vsyncadd (%p1547_p4), %s392_s24, 4294967232  ;;  %s1683_s0 = sshll.u32 %s1675_s5, 3  ;;  %s401_s4 = scalar_lea.sflag [#allocation6], %s391_s16 }
  0x70   : > { %s404_s15 = scalar_lea.vmem [#allocation5], %s1683_s0 }
  0x71   : > { %1408 = dma.done.wait (%p1547_p4), %s401_s4, 128  }
  0x72   : > { %1410 = vsyncadd (%p1547_p4), %s401_s4, 4294967168  ;;  %p1850_p8 = scmp.eq.s32.totalorder %s1538_s11, 0 }
  0x74   : > { %1412 = dma.done.wait (%p1850_p8), [#allocation6], 2048   ;;  %p1851_p2 = pmov %p1850_p8 }
  0x76   : > { %1414 = vsyncadd (%p1851_p2), [#allocation6], 4294965248  ;;  %p1852_p13 = pmov %p1851_p2 }
  0x77   : > { %p1853_p5 = pmov %p1851_p2 }
  0x78   : > { %1416 = dma.done.wait (%p1852_p13), [#allocation9], 2048  }
  0x79   : > { %1418 = vsyncadd (%p1853_p5), [#allocation9], 4294965248  ;;  %s421_s25 = scalar_lea.vmem [#allocation10], %s1683_s0 }
  0x7a   : > { %1420 = dma.done.wait (%p1547_p4), %s392_s24, 128  }
  0x7b   : > { %1422 = vsyncadd (%p1547_p4), %s392_s24, 4294967168  ;;  %v499_v0 = vlaneseq  ;;  %v1458_v1 = vmov 0.0   ;;  %vm1459_vm0 = vmmov 0   ;;  %v507_v3 = vld [vmem:[%s1805_s1 + $0x8] sm:$0xff]  ;;  %v506_v4 = vld [vmem:[%s1805_s1] sm:$0xff]  ;;  %vm508_vm1 = vcmask 130048  }
  0x7c   : > { %1039 = vmatprep.subr.mxu0 %v1458_v1  ;;  %1043 = vmatprep.mubr.msk.f32.mxu0 %vm1459_vm0, %v1458_v1  ;;  %v494_v5 = vld [vmem:[%s395_s27] sm:$0xf]  ;;  %v631_v8 = vld [vmem:[#allocation8 + $0x78] sm:$0xff]  ;;  %v630_v9 = vld [vmem:[#allocation8 + $0x70] sm:$0xff]  ;;  %v1460_v49 = vmov 0   ;;  %p485_p4 = scmp.lt.s32.totalorder %s1441_s30, 1 }
  0x7d   : > { %1046 = vmatprep.subr.mxu1 %v1458_v1  ;;  %1078 = vmatprep.mubr.msk.f32.mxu1 %vm1459_vm0, %v1458_v1  ;;  %v500_v2 = vshrl.u32 %v499_v0, 7  ;;  %v496_v7 = vld [vmem:[%s1806_s2] sm:$0x1]  ;;  %v495_v10 = vunpack.c.l.bf16 %v494_v5  ;;  %v628_v14 = vld [vmem:[#allocation8 + $0x60] sm:$0xff]  ;;  %v627_v16 = vld [vmem:[#allocation8 + $0x58] sm:$0xff]  ;;  %v589_v45 = vand.u32 127, %v499_v0 }
  0x7e   : > { %1040 = vmatpush3.msra.mxu0 %v507_v3  ;;  %v497_v11 = vmax.f32 %v496_v7, 0.0  ;;  %1047 = vmatpush3.msra.mxu1 %v631_v8  ;;  %v629_v12 = vld [vmem:[#allocation8 + $0x68] sm:$0xff]  ;;  %v626_v17 = vld [vmem:[#allocation8 + $0x50] sm:$0xff]  ;;  %v624_v19 = vld [vmem:[#allocation8 + $0x40] sm:$0xff]  ;;  %s486_s3 = scalar_select %p485_p4, %s1441_s30, 1 }
  0x7f   : > { %v501_v6 = vsub.s32 0, %v500_v2  ;;  %1041 = vmatprep.subr.mxu0 %v1458_v1  ;;  %1048 = vmatprep.subr.mxu1 %v1458_v1  ;;  %v625_v18 = vld [vmem:[#allocation8 + $0x48] sm:$0xff]  ;;  %v623_v20 = vld [vmem:[#allocation8 + $0x38] sm:$0xff]  ;;  %v622_v21 = vld [vmem:[#allocation8 + $0x30] sm:$0xff]  ;;  %vm590_vm2 = vcmp.eq.s32.totalorder %v589_v45, 32  ;;  %s1854_s9 = sld [smem:[#allocation24_spill]] }
  0x80   : > { %1042 = vmatpush3.msra.mxu0 %v506_v4  ;;  %1049 = vmatpush3.msra.mxu1 %v630_v9  ;;  %v621_v22 = vld [vmem:[#allocation8 + $0x28] sm:$0xff]  ;;  %v620_v23 = vld [vmem:[#allocation8 + $0x20] sm:$0xff]  ;;  %v619_v24 = vld [vmem:[#allocation8 + $0x18] sm:$0xff]  ;;  %s996_s20 = sshll.u32 %s486_s3, 3  ;;  %s999_s16 = sshll.u32 %s1441_s30, 7 }
  0x81   : > { %v502_v13 = vrot.slane %v497_v11, %v501_v6  ;;  %1081 = vmatprep.subr.mxu0 %v1458_v1  ;;  %1050 = vmatprep.subr.mxu1 %v1458_v1  ;;  %v618_v25 = vld [vmem:[#allocation8 + $0x10] sm:$0xff]  ;;  %v617_v26 = vld [vmem:[#allocation8 + $0x8] sm:$0xff]  ;;  %v616_v27 = vld [vmem:[#allocation8] sm:$0xff]  ;;  %s475_s22 = scalar_lea.vmem [#allocation11], %s1683_s0  ;;  %s782_s18 = scalar_lea.sflag [#allocation4], %s1675_s5 }
  0x82   : > { %1051 = vmatpush3.msra.mxu1 %v629_v12  ;;  %v615_v28 = vld [vmem:[#allocation7 + $0x78] sm:$0xff]  ;;  %v614_v29 = vld [vmem:[#allocation7 + $0x70] sm:$0xff]  ;;  %v613_v30 = vld [vmem:[#allocation7 + $0x68] sm:$0xff]  ;;  %1214 = vset.pattern.permute.xlu0 %v1460_v49  ;;  %s795_s24 = sshll.u32 %s475_s22, 4  ;;  %s1461_s19 = smov [#allocation11]   ;;  %s796_s24 = int_to_ptr.vmem [resolvable:$true] %s795_s24 }
  0x83   : > { %v504_v15 = vmul.f32 %v502_v13, %v495_v10  ;;  %1052 = vmatprep.subr.mxu1 %v1458_v1  ;;  %v612_v31 = vld [vmem:[#allocation7 + $0x60] sm:$0xff]  ;;  %v611_v32 = vld [vmem:[#allocation7 + $0x58] sm:$0xff]  ;;  %v610_v33 = vld [vmem:[#allocation7 + $0x50] sm:$0xff]  ;;  %s1353_s13 = scalar_lea.vmem %s796_s24, 128  ;;  %s1357_s17 = sshll.u32 %s1461_s19, 4  ;;  %s1358_s17 = int_to_ptr.vmem [resolvable:$false] %s1357_s17 }
  0x84   : > { %1053 = vmatpush3.msra.mxu1 %v628_v14  ;;  %v609_v34 = vld [vmem:[#allocation7 + $0x48] sm:$0xff]  ;;  %v608_v35 = vld [vmem:[#allocation7 + $0x40] sm:$0xff]  ;;  %v607_v36 = vld [vmem:[#allocation7 + $0x38] sm:$0xff]  ;;  %p1354_p9 = scmp.ne.s32.totalorder %s796_s24, %s1353_s13  ;;  %s1359_s30 = scalar_lea.vmem %s1358_s17, 256 }
  0x85   : > { %1044 = vmatmul.mubr.msk.f32.vlgmr.msra.gmra.mxu0 %vm508_vm1, %v504_v15  ;;  %1054 = vmatprep.subr.mxu1 %v1458_v1  ;;  %v606_v37 = vld [vmem:[#allocation7 + $0x30] sm:$0xff]  ;;  %v605_v38 = vld [vmem:[#allocation7 + $0x28] sm:$0xff]  ;;  %v604_v39 = vld [vmem:[#allocation7 + $0x20] sm:$0xff]  ;;  %s488_s21 = scalar_lea.vmem %s1854_s9, %s996_s20  ;;  %p1360_p12 = scmp.lt.s32.totalorder %s796_s24, %s1358_s17 }
  0x86   : > { %1113 = vmatprep.mubr.msk.f32.mxu0 %vm1459_vm0, %v1458_v1  ;;  %1055 = vmatpush3.msra.mxu1 %v627_v16  ;;  %v603_v40 = vld [vmem:[#allocation7 + $0x18] sm:$0xff]  ;;  %v602_v41 = vld [vmem:[#allocation7 + $0x10] sm:$0xff]  ;;  %v601_v42 = vld [vmem:[#allocation7 + $0x8] sm:$0xff]  ;;  %p1355_p10 = pnand %p1354_p9, %p1596_p3  ;;  %p1361_p11 = scmp.lt.s32.totalorder %s1359_s30, %s1353_s13 }
  0x87   : > { %1056 = vmatprep.subr.mxu1 %v1458_v1  ;;  %1082 = vmatpush3.msra.mxu0 %v615_v28  ;;  %v600_v43 = vld [vmem:[#allocation7] sm:$0xff]  ;;  %v599_v44 = vld [vmem:[%s404_s15] sm:$0xff]  ;;  %v594_v54 = vld [vmem:[%s488_s21] sm:$0xff]  ;;  %s1855_s15 = sld [smem:[#allocation26_spill]] }
  0x88   : > { %1057 = vmatpush3.msra.mxu1 %v626_v17  ;;  %1083 = vmatprep.subr.mxu0 %v1458_v1  ;;  %v595_v55 = vmax.f32 %v594_v54, 0.0  ;;  %v778_v62 = vld [vmem:[%s421_s25] sm:$0xff]  ;;  %p1356_p1 = pneg %p1355_p10  ;;  %p1362_p0 = por %p1361_p11, %p1360_p12 }
  0x89   : > { %1058 = vmatprep.subr.mxu1 %v1458_v1  ;;  %1084 = vmatpush3.msra.mxu0 %v614_v29 }
  0x8a   : > { %1059 = vmatpush3.msra.mxu1 %v625_v18  ;;  %1085 = vmatprep.subr.mxu0 %v1458_v1  ;;  %p1363_p7 = pnand %p1362_p0, %p1356_p1 }
  0x8b   : > { %1060 = vmatprep.subr.mxu1 %v1458_v1  ;;  %1086 = vmatpush3.msra.mxu0 %v613_v30 }
  0x8c   : > { %1061 = vmatpush3.msra.mxu1 %v624_v19  ;;  %1087 = vmatprep.subr.mxu0 %v1458_v1 }
  0x8d   : > { %1062 = vmatprep.subr.mxu1 %v1458_v1  ;;  %1088 = vmatpush3.msra.mxu0 %v612_v31  ;;  %s793_s11 = scalar_lea.hbm %s1855_s15, %s999_s16 }
  0x8e   : > { %1063 = vmatpush3.msra.mxu1 %v623_v20  ;;  %1089 = vmatprep.subr.mxu0 %v1458_v1 }
  0x8f   : > { %1064 = vmatprep.subr.mxu1 %v1458_v1  ;;  %1090 = vmatpush3.msra.mxu0 %v611_v32 }
  0x90   : > { %1065 = vmatpush3.msra.mxu1 %v622_v21  ;;  %1091 = vmatprep.subr.mxu0 %v1458_v1 }
  0x91   : > { %1066 = vmatprep.subr.mxu1 %v1458_v1  ;;  %1092 = vmatpush3.msra.mxu0 %v610_v33 }
  0x92   : > { %1067 = vmatpush3.msra.mxu1 %v621_v22  ;;  %1093 = vmatprep.subr.mxu0 %v1458_v1 }
  0x93   : > { %1068 = vmatprep.subr.mxu1 %v1458_v1  ;;  %1094 = vmatpush3.msra.mxu0 %v609_v34 }
  0x94   : > { %1069 = vmatpush3.msra.mxu1 %v620_v23  ;;  %1095 = vmatprep.subr.mxu0 %v1458_v1 }
  0x95   : > { %1070 = vmatprep.subr.mxu1 %v1458_v1  ;;  %1096 = vmatpush3.msra.mxu0 %v608_v35 }
  0x96   : > { %1071 = vmatpush3.msra.mxu1 %v619_v24  ;;  %1097 = vmatprep.subr.mxu0 %v1458_v1 }
  0x97   : > { %1072 = vmatprep.subr.mxu1 %v1458_v1  ;;  %1098 = vmatpush3.msra.mxu0 %v607_v36 }
  0x98   : > { %1073 = vmatpush3.msra.mxu1 %v618_v25  ;;  %1099 = vmatprep.subr.mxu0 %v1458_v1 }
  0x99   : > { %1074 = vmatprep.subr.mxu1 %v1458_v1  ;;  %1100 = vmatpush3.msra.mxu0 %v606_v37 }
  0x9a   : > { %1075 = vmatpush3.msra.mxu1 %v617_v26  ;;  %1101 = vmatprep.subr.mxu0 %v1458_v1 }
  0x9b   : > { %1076 = vmatprep.subr.mxu1 %v1458_v1  ;;  %1102 = vmatpush3.msra.mxu0 %v605_v38 }
  0x9c   : > { %1077 = vmatpush3.msra.mxu1 %v616_v27  ;;  %1103 = vmatprep.subr.mxu0 %v1458_v1 }
  0x9d   : > { %1104 = vmatpush3.msra.mxu0 %v604_v39 }
  0x9e   : > { %1105 = vmatprep.subr.mxu0 %v1458_v1 }
  0x9f   : > { %1106 = vmatpush3.msra.mxu0 %v603_v40 }
  0xa0   : > { %1107 = vmatprep.subr.mxu0 %v1458_v1 }
  0xa1   : > { %1108 = vmatpush3.msra.mxu0 %v602_v41 }
  0xa2   : > { %1109 = vmatprep.subr.mxu0 %v1458_v1 }
  0xa3   : > { %1110 = vmatpush3.msra.mxu0 %v601_v42 }
  0xa4   : > { %1111 = vmatprep.subr.mxu0 %v1458_v1 }
  0xa5   : > { %1112 = vmatpush3.msra.mxu0 %v600_v43 }
  0xa6   : > { %1114 = vmatmul.mubr.f32.vlgmr.msra.gmra.mxu0 %v599_v44 }
 0x145   : > { %v578_v46 = vpop.f32.mrf.mxu0 }
 0x146   : > { %1079 = vmatmul.mubr.f32.vlgmr.msra.gmra.mxu1 %v578_v46  ;;  %v591_v48 = vsel %vm590_vm2, %v578_v46, 0.0 }
 0x147   : > { %v1045_v47 = vpop.f32.mrf.mxu0  ;;  %592 = vadd.xlane.f32.xlu0 %v591_v48 }
 0x166   : > { %v774_v50 = vpop.f32.mrf.mxu0 }
 0x168   : > { %v1115_v51 = vpop.f32.mrf.mxu0 }
 0x1d0   : > { %v593_v52 = vpop.xlane.xlu0 %592 }
 0x1d1   : > { %v596_v53 = vadd.f32 1e-14, %v593_v52 }
 0x1d3   : > { %1215 = vrcp.f32 %v596_v53 }
 0x1e0   : > { %v1216_v56 = vpop.eup %1215 }
 0x1e1   : > { %v598_v57 = vmul.f32 %v1216_v56, %v595_v55 }
 0x1e3   : > { %704 = vperm.xlu0 %1214, %v598_v57  }
 0x206   : > { %v698_v58 = vpop.f32.mrf.mxu1 }
 0x208   : > { %v1080_v59 = vpop.f32.mrf.mxu1 }
 0x25e   : > { %v705_v60 = vpop.permute.xlu0 %704 }
 0x25f   : > { %v707_v61 = vmul.f32 %v705_v60, %v698_v58 }
 0x261   : > { %v775_v63 = vadd.f32 %v774_v50, %v707_v61 }
 0x263   : > { %v779_v0 = vadd.f32 %v778_v62, %v775_v63 }
 0x265   : > { %780 = vst [vmem:[%s475_s22] sm:$0xff] %v779_v0 }
 0x266   : > { %1366 = shalt.err (!%p1363_p7)
}
 0x267   : > { %s1367_s0 = scalar_lea.hbm %s793_s11, 128  ;;  %s1371_s26 = scalar_lea.hbm %s1855_s15, 256 }
 0x268   : > { %p1368_p8 = scmp.ne.s32.totalorder %s793_s11, %s1367_s0  ;;  %p1372_p5 = scmp.lt.s32.totalorder %s793_s11, %s1855_s15 }
 0x269   : > { %p1373_p4 = scmp.lt.s32.totalorder %s1371_s26, %s1367_s0 }
 0x26a   : > { %p1369_p2 = pnand %p1368_p8, %p1596_p3 }
 0x26b   : > { %p1374_p9 = por %p1373_p4, %p1372_p5 }
 0x26c   : > { %p1370_p13 = pneg %p1369_p2 }
 0x26e   : > { %p1375_p10 = pnand %p1374_p9, %p1370_p13 }
 0x270   : > { %1378 = shalt.err (!%p1375_p10)
}
 0x271   : > { %1130 = dma.vmem_to_hbm [thread:$0]  (%p1596_p3), %s796_s24, 128, %s793_s11, %s782_s18  }
 0x272 PF: > { %s1856_s8 = sld [smem:[#allocation18_spill]]  ;;  %p1858_p1 = scmp.ge.s32.totalorder %s1449_s10, 2 }
 0x274   : > { %p1150_p12 = pnand %p1858_p1, %p1552_p6 }
 0x276   : > { %p1151_p11 = pneg %p1150_p12 }
 0x278   : > { %s807_s9 = sand.u32 1, %s1856_s8  }
 0x279   : > { %s808_s21 = scalar_lea.sflag [#allocation4], %s807_s9 }
 0x27a   : > { %1424 = dma.done.wait (%p1151_p11), %s808_s21, 128  }
 0x27b   : > { %1426 = vsyncadd (%p1151_p11), %s808_s21, 4294967168  ;;  %s28_s10 = sadd.s32 1, %s1449_s10   ;;  %s1859_s30 = sld [smem:[#allocation19_spill]] }
 0x27c   : > { %p25_p0 = scmp.ge.s32.totalorder %s28_s10, 4   ;;  %s1860_s9 = sld [smem:[#allocation21_spill]] }
 0x27d   : > { %s1861_s27 = smov %s1433_s28  ;;  %s1862_s28 = smov %s1437_s29 }
 0x27e   : > { %s1863_s29 = smov %s1606_s23  ;;  %27 = sbr.rel (!%p25_p0) target bundleno = 15 (0xf), region = 146 }
 0x283   :  { %813 = vsyncpa [#allocation3], 1 }
 0x284   :  { %815 = vsyncpa [#allocation3 + $0x1], 1 }
 0x285   :  { %816 = vsyncpa [#allocation6], 1 }
 0x286   :  { %818 = vsyncpa [#allocation6 + $0x1], 1 }
 0x287   :  { %819 = vsyncpa [#allocation9], 1 }
 0x288   :  { %820 = vsyncpa [#allocation4], 1 }
 0x289   :  { %822 = vsyncpa [#allocation4 + $0x1], 1 }

</bundles_post_ra>
